<compile_context>
chip_gen: v7x
topology: tpu7x:2x2x1
jax: 0.10.0
libtpu: 0.0.40
codegen_flags: <defaults>
</compile_context>

<pallas_src>
import jax
import jax.numpy as jnp
from jax.experimental import pallas as pl
from jax.experimental.pallas import tpu as pltpu


# ---------------------------------------------------------------------------
# Config mirroring the PyTorch `args`
# ---------------------------------------------------------------------------
IMAGE_SIZE = 16          # args.image_size
NUM_LAYERS = 3           # args.num_layers
NUM_CLASSES = 10         # args.num_classes
BATCH = 2

INPUT_SIZE = IMAGE_SIZE * IMAGE_SIZE * 3   # 768

LANE = 128
OUT_PAD = ((NUM_CLASSES + LANE - 1) // LANE) * LANE   # 128 (lane-dense logits)


def _layer_dims():
    """(in_features, out_features) per Linear, exactly like the module."""
    dims = [(INPUT_SIZE, 512)]
    in_ch = 512
    for _ in range(NUM_LAYERS - 1):
        dims.append((in_ch, in_ch // 2))
        in_ch //= 2
    dims.append((in_ch, NUM_CLASSES))
    return dims


LAYER_DIMS = _layer_dims()        # [(768,512), (512,256), (256,128), (128,10)]
N_LINEAR = len(LAYER_DIMS)        # 4

# Output features per layer as seen by the kernel (final layer padded to 128).
PADDED_OUT = [d[1] for d in LAYER_DIMS[:-1]] + [OUT_PAD]        # [512,256,128,128]
BIAS_OFFSETS = [sum(PADDED_OUT[:i]) for i in range(N_LINEAR)]   # [0,512,768,896]
BIAS_TOTAL = sum(PADDED_OUT)                                    # 1024


# ---------------------------------------------------------------------------
# Pallas kernel: fused MLP forward (matmul -> bias -> ReLU chain)
# ---------------------------------------------------------------------------
def dnn_kernel(x_ref, w0_ref, w1_ref, w2_ref, w3_ref, bcat_ref, out_ref):
    w_refs = (w0_ref, w1_ref, w2_ref, w3_ref)
    # f32 on the wire, bf16 on the MXU; the cast lives inside the kernel so
    # no separate XLA pass materializes a bf16 copy of x in HBM.
    h = x_ref[...].astype(jnp.bfloat16)              # (TM, 768) bf16
    for li, w_ref in enumerate(w_refs):
        out_f = PADDED_OUT[li]
        off = BIAS_OFFSETS[li]
        b = bcat_ref[:, off:off + out_f]             # static slice, (1, out_f) f32
        # bf16 x bf16 on the MXU, f32 accumulation.
        acc = jnp.dot(h, w_ref[...], preferred_element_type=jnp.float32) + b
        if li < N_LINEAR - 1:                        # ReLU on all but final layer
            h = jnp.maximum(acc, 0.0).astype(jnp.bfloat16)
        else:
            out_ref[...] = acc                       # lane-dense (TM, 128) f32 store


# ---------------------------------------------------------------------------
# One-time parameter preprocessing (OUT of the hot path)
# ---------------------------------------------------------------------------
def prepare_params(params):
    """params: list of (W, b), W shaped (out, in) like PyTorch Linear.

    Returns (weights_tuple, bias_concat):
      * each weight transposed to (in, out) and cast to bf16,
      * the final layer zero-padded to 128 output lanes,
      * all biases concatenated into a single (1, 1024) f32 row.
    """
    kernel_ws = []
    bias_segs = []
    for li, (w, b) in enumerate(params):
        wt = jnp.transpose(w).astype(jnp.bfloat16)   # (in, out)
        bv = b.astype(jnp.float32)
        if li == N_LINEAR - 1 and wt.shape[1] < OUT_PAD:
            pad = OUT_PAD - wt.shape[1]
            wt = jnp.pad(wt, ((0, 0), (0, pad)))     # zero columns -> zero logits
            bv = jnp.pad(bv, (0, pad))
        kernel_ws.append(wt)
        bias_segs.append(bv)
    bcat = jnp.concatenate(bias_segs).reshape(1, BIAS_TOTAL)
    return tuple(kernel_ws), bcat


# ---------------------------------------------------------------------------
# Hot-path forward
# ---------------------------------------------------------------------------
@jax.jit
def dnn_forward(x_nchw, kernel_ws, bcat):
    n = x_nchw.shape[0]
    # Same C*H*W flattening order as x.view(x.size(0), -1). Kept f32: the
    # bf16 cast happens inside the kernel (no extra HBM round-trip).
    x_flat = x_nchw.reshape(n, -1)

    # Batch tiling:
    #   n <= 512  -> single grid step (no megacore split, no step overhead).
    #   n  > 512  -> 512-row tiles (multiple of 256 for the v6e MXU); only
    #                mark "parallel" (v7x megacore sharding, which replicates
    #                the weights into both cores' VMEM) once the batch is big
    #                enough to amortize the extra weight DMA.
    if n <= 512:
        tm = n
        semantics = ("arbitrary",)
    else:
        tm = 512
        semantics = ("parallel",) if n >= 1024 else ("arbitrary",)
    grid = (pl.cdiv(n, tm),)

    flops = 2 * n * sum(fi * fo for fi, fo in LAYER_DIMS)
    bytes_accessed = (
        x_flat.size * 4                                   # f32 activations in
        + sum(int(w.size) * 2 for w in kernel_ws)         # bf16 weights
        + int(bcat.size) * 4                              # f32 bias row
        + n * OUT_PAD * 4                                 # f32 logits out
    )

    in_specs = [pl.BlockSpec((tm, INPUT_SIZE), lambda i: (i, 0))]
    for w in kernel_ws:                               # weights replicated / resident
        in_specs.append(pl.BlockSpec(w.shape, lambda i: (0, 0)))
    in_specs.append(pl.BlockSpec((1, BIAS_TOTAL), lambda i: (0, 0)))

    out = pl.pallas_call(
        dnn_kernel,
        out_shape=jax.ShapeDtypeStruct((n, OUT_PAD), jnp.float32),
        grid=grid,
        in_specs=in_specs,
        out_specs=pl.BlockSpec((tm, OUT_PAD), lambda i: (i, 0)),
        compiler_params=pltpu.CompilerParams(
            dimension_semantics=semantics),
        cost_estimate=pl.CostEstimate(
            flops=flops, transcendentals=0, bytes_accessed=bytes_accessed),
    )(x_flat, *kernel_ws, bcat)
    return out[:, :NUM_CLASSES]


# ---------------------------------------------------------------------------
# Deterministic parameter init (PyTorch-style uniform(-1/sqrt(in), 1/sqrt(in)))
# ---------------------------------------------------------------------------
def init_params(key):
    params = []
    for (fan_in, fan_out) in LAYER_DIMS:
        key, kw, kb = jax.random.split(key, 3)
        bound = 1.0 / jnp.sqrt(jnp.float32(fan_in))
        w = jax.random.uniform(kw, (fan_out, fan_in), jnp.float32, -bound, bound)
        b = jax.random.uniform(kb, (fan_out,), jnp.float32, -bound, bound)
        params.append((w, b))
    return params


def reference_forward(x_nchw, params):
    """Plain-JAX f32 reference replicating the PyTorch forward."""
    h = x_nchw.reshape(x_nchw.shape[0], -1)
    for li, (w, b) in enumerate(params):
        h = h @ w.T + b
        if li < len(params) - 1:
            h = jnp.maximum(h, 0.0)
    return h


if __name__ == "__main__":
    key = jax.random.PRNGKey(0)
    key, kx = jax.random.split(key)
    x = jax.random.normal(kx, (BATCH, 3, IMAGE_SIZE, IMAGE_SIZE), jnp.float32)

    params = init_params(key)
    kernel_ws, bcat = prepare_params(params)   # one-time prep, reused every call

    out = dnn_forward(x, kernel_ws, bcat)
    out = jax.block_until_ready(out)

    ref = reference_forward(x, params)
    assert out.shape == (BATCH, NUM_CLASSES), out.shape
    # bf16 weights/activations (intentional bandwidth trade) -> loosened tolerance.
    assert jnp.allclose(out, ref, atol=5e-2, rtol=5e-2), \
        float(jnp.max(jnp.abs(out - ref)))

    print("KERNEL_OK")
</pallas_src>

<mosaic_0001>
module attributes {stable_mosaic.version = 11 : i64} {
  func.func @dnn_kernel(%arg0: i32, %arg1: memref<2x768xf32, #tpu.memory_space<vmem>>, %arg2: memref<768x512xbf16, #tpu.memory_space<vmem>>, %arg3: memref<512x256xbf16, #tpu.memory_space<vmem>>, %arg4: memref<256x128xbf16, #tpu.memory_space<vmem>>, %arg5: memref<128x128xbf16, #tpu.memory_space<vmem>>, %arg6: memref<1x1024xf32, #tpu.memory_space<vmem>>, %arg7: memref<2x128xf32, #tpu.memory_space<vmem>>) attributes {dimension_semantics = [#tpu.dimension_semantics<arbitrary>], iteration_bounds = array<i64: 1>, scalar_prefetch = 0 : i64, scratch_operands = 0 : i64, tpu.core_type = #tpu.core_type<tc>, window_params = [{transform_indices = @transform_0, window_bounds = array<i64: 2, 768>}, {pipeline_mode = #tpu.pipeline_mode<synchronous>, transform_indices = @transform_1, window_bounds = array<i64: 768, 512>}, {pipeline_mode = #tpu.pipeline_mode<synchronous>, transform_indices = @transform_2, window_bounds = array<i64: 512, 256>}, {pipeline_mode = #tpu.pipeline_mode<synchronous>, transform_indices = @transform_3, window_bounds = array<i64: 256, 128>}, {pipeline_mode = #tpu.pipeline_mode<synchronous>, transform_indices = @transform_4, window_bounds = array<i64: 128, 128>}, {pipeline_mode = #tpu.pipeline_mode<synchronous>, transform_indices = @transform_5, window_bounds = array<i64: 1, 1024>}, {transform_indices = @transform_6, window_bounds = array<i64: 2, 128>}]} {
    %c0 = arith.constant 0 : index
    %c0_0 = arith.constant 0 : index
    %0 = vector.load %arg1[%c0, %c0_0] : memref<2x768xf32, #tpu.memory_space<vmem>>, vector<2x768xf32>
    %1 = arith.truncf %0 : vector<2x768xf32> to vector<2x768xbf16>
    %c0_1 = arith.constant 0 : index
    %c0_2 = arith.constant 0 : index
    %2 = vector.load %arg6[%c0_1, %c0_2] : memref<1x1024xf32, #tpu.memory_space<vmem>>, vector<1x512xf32>
    %c0_3 = arith.constant 0 : index
    %c0_4 = arith.constant 0 : index
    %3 = vector.load %arg2[%c0_3, %c0_4] : memref<768x512xbf16, #tpu.memory_space<vmem>>, vector<768x512xbf16>
    %cst = arith.constant dense<0.000000e+00> : vector<2x512xf32>
    %4 = tpu.matmul %1, %3, %cst {dimension_numbers = #tpu.dot_dimension_numbers<[1], [0], [0], [1], [0, 0, 1, 1], [], []>} : vector<2x768xbf16>, vector<768x512xbf16>, vector<2x512xf32> -> vector<2x512xf32>
    %5 = vector.broadcast %2 : vector<1x512xf32> to vector<2x512xf32>
    %6 = arith.addf %4, %5 : vector<2x512xf32>
    %cst_5 = arith.constant 0.000000e+00 : f32
    %7 = vector.broadcast %cst_5 : f32 to vector<2x512xf32>
    %8 = arith.maximumf %6, %7 : vector<2x512xf32>
    %9 = arith.truncf %8 : vector<2x512xf32> to vector<2x512xbf16>
    %c0_6 = arith.constant 0 : index
    %c512 = arith.constant 512 : index
    %10 = vector.load %arg6[%c0_6, %c512] : memref<1x1024xf32, #tpu.memory_space<vmem>>, vector<1x256xf32>
    %c0_7 = arith.constant 0 : index
    %c0_8 = arith.constant 0 : index
    %11 = vector.load %arg3[%c0_7, %c0_8] : memref<512x256xbf16, #tpu.memory_space<vmem>>, vector<512x256xbf16>
    %cst_9 = arith.constant dense<0.000000e+00> : vector<2x256xf32>
    %12 = tpu.matmul %9, %11, %cst_9 {dimension_numbers = #tpu.dot_dimension_numbers<[1], [0], [0], [1], [0, 0, 1, 1], [], []>} : vector<2x512xbf16>, vector<512x256xbf16>, vector<2x256xf32> -> vector<2x256xf32>
    %13 = vector.broadcast %10 : vector<1x256xf32> to vector<2x256xf32>
    %14 = arith.addf %12, %13 : vector<2x256xf32>
    %cst_10 = arith.constant 0.000000e+00 : f32
    %15 = vector.broadcast %cst_10 : f32 to vector<2x256xf32>
    %16 = arith.maximumf %14, %15 : vector<2x256xf32>
    %17 = arith.truncf %16 : vector<2x256xf32> to vector<2x256xbf16>
    %c0_11 = arith.constant 0 : index
    %c768 = arith.constant 768 : index
    %18 = vector.load %arg6[%c0_11, %c768] : memref<1x1024xf32, #tpu.memory_space<vmem>>, vector<1x128xf32>
    %c0_12 = arith.constant 0 : index
    %c0_13 = arith.constant 0 : index
    %19 = vector.load %arg4[%c0_12, %c0_13] : memref<256x128xbf16, #tpu.memory_space<vmem>>, vector<256x128xbf16>
    %cst_14 = arith.constant dense<0.000000e+00> : vector<2x128xf32>
    %20 = tpu.matmul %17, %19, %cst_14 {dimension_numbers = #tpu.dot_dimension_numbers<[1], [0], [0], [1], [0, 0, 1, 1], [], []>} : vector<2x256xbf16>, vector<256x128xbf16>, vector<2x128xf32> -> vector<2x128xf32>
    %21 = vector.broadcast %18 : vector<1x128xf32> to vector<2x128xf32>
    %22 = arith.addf %20, %21 : vector<2x128xf32>
    %cst_15 = arith.constant 0.000000e+00 : f32
    %23 = vector.broadcast %cst_15 : f32 to vector<2x128xf32>
    %24 = arith.maximumf %22, %23 : vector<2x128xf32>
    %25 = arith.truncf %24 : vector<2x128xf32> to vector<2x128xbf16>
    %c0_16 = arith.constant 0 : index
    %c896 = arith.constant 896 : index
    %26 = vector.load %arg6[%c0_16, %c896] : memref<1x1024xf32, #tpu.memory_space<vmem>>, vector<1x128xf32>
    %c0_17 = arith.constant 0 : index
    %c0_18 = arith.constant 0 : index
    %27 = vector.load %arg5[%c0_17, %c0_18] : memref<128x128xbf16, #tpu.memory_space<vmem>>, vector<128x128xbf16>
    %cst_19 = arith.constant dense<0.000000e+00> : vector<2x128xf32>
    %28 = tpu.matmul %25, %27, %cst_19 {dimension_numbers = #tpu.dot_dimension_numbers<[1], [0], [0], [1], [0, 0, 1, 1], [], []>} : vector<2x128xbf16>, vector<128x128xbf16>, vector<2x128xf32> -> vector<2x128xf32>
    %29 = vector.broadcast %26 : vector<1x128xf32> to vector<2x128xf32>
    %30 = arith.addf %28, %29 : vector<2x128xf32>
    %c0_20 = arith.constant 0 : index
    %c0_21 = arith.constant 0 : index
    %31 = vector.load %arg7[%c0_20, %c0_21] : memref<2x128xf32, #tpu.memory_space<vmem>>, vector<2x128xf32>
    tpu.vector_store %arg7[%c0_20, %c0_21], %30 {strides = array<i32>} : memref<2x128xf32, #tpu.memory_space<vmem>>, vector<2x128xf32>,
    return
  }
  func.func @transform_0(%arg0: i32) -> (i32, i32) {
    %c0_i32 = arith.constant 0 : i32
    %c0_i32_0 = arith.constant 0 : i32
    return %arg0, %c0_i32 : i32, i32
  }
  func.func @transform_1(%arg0: i32) -> (i32, i32) {
    %c0_i32 = arith.constant 0 : i32
    %c0_i32_0 = arith.constant 0 : i32
    %c0_i32_1 = arith.constant 0 : i32
    return %c0_i32, %c0_i32_0 : i32, i32
  }
  func.func @transform_2(%arg0: i32) -> (i32, i32) {
    %c0_i32 = arith.constant 0 : i32
    %c0_i32_0 = arith.constant 0 : i32
    %c0_i32_1 = arith.constant 0 : i32
    return %c0_i32, %c0_i32_0 : i32, i32
  }
  func.func @transform_3(%arg0: i32) -> (i32, i32) {
    %c0_i32 = arith.constant 0 : i32
    %c0_i32_0 = arith.constant 0 : i32
    %c0_i32_1 = arith.constant 0 : i32
    return %c0_i32, %c0_i32_0 : i32, i32
  }
  func.func @transform_4(%arg0: i32) -> (i32, i32) {
    %c0_i32 = arith.constant 0 : i32
    %c0_i32_0 = arith.constant 0 : i32
    %c0_i32_1 = arith.constant 0 : i32
    return %c0_i32, %c0_i32_0 : i32, i32
  }
  func.func @transform_5(%arg0: i32) -> (i32, i32) {
    %c0_i32 = arith.constant 0 : i32
    %c0_i32_0 = arith.constant 0 : i32
    %c0_i32_1 = arith.constant 0 : i32
    return %c0_i32, %c0_i32_0 : i32, i32
  }
  func.func @transform_6(%arg0: i32) -> (i32, i32) {
    %c0_i32 = arith.constant 0 : i32
    %c0_i32_0 = arith.constant 0 : i32
    return %arg0, %c0_i32 : i32, i32
  }
}

</mosaic_0001>

<bundles_post_ra>
// kernel: dnn_forward.1
= control target key start
LH: loop header
LB: loop body
LE: loop exit
PB: predicated region body
PF: predicated region fallthrough
CT: control target
= control target key end

     0   :  { %11 = vsyncpa [#allocation3], 0  ;;  %s3372_s0 = inlined_call_operand.vmem [shape: f32[2,768], index: 0, kind: input, shape index: {}]   ;;  %s3373_s1 = inlined_call_operand.hbm [shape: bf16[768,512], index: 1, kind: input, shape index: {}]   ;;  %s3374_s2 = inlined_call_operand.hbm [shape: bf16[512,256], index: 2, kind: input, shape index: {}]   ;;  %s3375_s3 = inlined_call_operand.hbm [shape: bf16[256,128], index: 3, kind: input, shape index: {}]   ;;  %s3376_s4 = inlined_call_operand.vmem [shape: bf16[128,128], index: 4, kind: input, shape index: {}]   ;;  %s3377_s5 = inlined_call_operand.vmem [shape: f32[1,1024], index: 5, kind: input, shape index: {}]   ;;  %s3378_s6 = inlined_call_operand.hbm [shape: f32[2,128], index: 6, kind: output, shape index: {}]  }
   0x1   :  { %12 = vsyncpa [#allocation6], 0 }
   0x2   :  { %13 = vsyncpa [#allocation4], 0  ;;  %s3198_s21 = smov [#allocation5]   ;;  %s3104_s25 = scalar_lea.hbm %s3374_s2, 8192 }
   0x3   :  { %s33_s22 = sshll.u32 %s3198_s21, 4  ;;  %p3105_p0 = scmp.ne.s32.totalorder %s3374_s2, %s3104_s25  ;;  %s34_s22 = int_to_ptr.vmem [resolvable:$true] %s33_s22 }
   0x4   :  { %p3108_p1 = scmp.lt.u32.totalorder %s3104_s25, %s3374_s2 }
   0x6   :  { %p3110_p2 = pnand %p3108_p1, %p3105_p0 }
   0x8   :  { %3113 = shalt.err (!%p3110_p2)
}
   0x9   :  { %s3114_s30 = scalar_lea.vmem %s34_s22, 8192  ;;  %p3119_p4 = scmp.lt.s32.totalorder %s34_s22, %s34_s22 }
   0xa   :  { %p3115_p3 = scmp.ne.s32.totalorder %s34_s22, %s3114_s30  ;;  %p3120_p5 = scmp.lt.s32.totalorder %s3114_s30, %s3114_s30 }
   0xc   :  { %p3121_p6 = por %p3120_p5, %p3119_p4 }
   0xe   :  { %p3122_p7 = pnand %p3121_p6, %p3115_p3 }
  0x10   :  { %3125 = shalt.err (!%p3122_p7)
}
  0x11   :  { %s3199_s7 = smov 128   ;;  %s3200_s8 = smov 8  }
  0x12   :  { %39 = dma.hbm_to_vmem [thread:$0]  %s3374_s2, 8192, %s34_s22, [#allocation6], %s3199_s7, %s3199_s7, %s3200_s8  }
  0x13   :  { %s3201_s11 = smov [#allocation2]   ;;  %s3126_s15 = scalar_lea.hbm %s3373_s1, 24576 }
  0x14   :  { %s21_s12 = sshll.u32 %s3201_s11, 4  ;;  %p3127_p8 = scmp.ne.s32.totalorder %s3373_s1, %s3126_s15  ;;  %s22_s12 = int_to_ptr.vmem [resolvable:$true] %s21_s12 }
  0x15   :  { %p3130_p9 = scmp.lt.u32.totalorder %s3126_s15, %s3373_s1 }
  0x17   :  { %p3132_p10 = pnand %p3130_p9, %p3127_p8 }
  0x19   :  { %3135 = shalt.err (!%p3132_p10)
}
  0x1a   :  { %s3136_s20 = scalar_lea.vmem %s22_s12, 24576  ;;  %p3141_p12 = scmp.lt.s32.totalorder %s22_s12, %s22_s12 }
  0x1b   :  { %p3137_p11 = scmp.ne.s32.totalorder %s22_s12, %s3136_s20  ;;  %p3142_p13 = scmp.lt.s32.totalorder %s3136_s20, %s3136_s20 }
  0x1d   :  { %p3143_p0 = por %p3142_p13, %p3141_p12 }
  0x1f   :  { %p3144_p1 = pnand %p3143_p0, %p3137_p11 }
  0x21   :  { %3147 = shalt.err (!%p3144_p1)
}
  0x22   :  { %s3202_s2 = smov 256   ;;  %s3203_s21 = smov 16  }
  0x23   :  { %27 = dma.hbm_to_vmem [thread:$0]  %s3373_s1, 24576, %s22_s12, [#allocation3], %s3202_s2, %s3202_s2, %s3203_s21  }
  0x24   :  { %s3204_s24 = smov [#allocation7]   ;;  %s3148_s28 = scalar_lea.hbm %s3375_s3, 2048 }
  0x25   :  { %s45_s25 = sshll.u32 %s3204_s24, 4  ;;  %p3149_p2 = scmp.ne.s32.totalorder %s3375_s3, %s3148_s28  ;;  %s46_s25 = int_to_ptr.vmem [resolvable:$true] %s45_s25 }
  0x26   :  { %p3152_p3 = scmp.lt.u32.totalorder %s3148_s28, %s3375_s3 }
  0x28   :  { %p3154_p4 = pnand %p3152_p3, %p3149_p2 }
  0x2a   :  { %3157 = shalt.err (!%p3154_p4)
}
  0x2b   :  { %s3158_s9 = scalar_lea.vmem %s46_s25, 2048  ;;  %p3163_p6 = scmp.lt.s32.totalorder %s46_s25, %s46_s25 }
  0x2c   :  { %p3159_p5 = scmp.ne.s32.totalorder %s46_s25, %s3158_s9  ;;  %p3164_p7 = scmp.lt.s32.totalorder %s3158_s9, %s3158_s9 }
  0x2e   :  { %p3165_p8 = por %p3164_p7, %p3163_p6 }
  0x30   :  { %p3166_p9 = pnand %p3165_p8, %p3159_p5 }
  0x32   :  { %3169 = shalt.err (!%p3166_p9)
}
  0x33   :  { %s3205_s1 = smov 64   ;;  %s3206_s10 = smov 4  }
  0x34   :  { %51 = dma.hbm_to_vmem [thread:$0]  %s3375_s3, 2048, %s46_s25, [#allocation6], %s3205_s1, %s3205_s1, %s3206_s10  }
  0x35   :  { %3192 = dma.done.wait [#allocation3], 24576  }
  0x36   :  { %3193 = vsyncadd [#allocation3], 4294942720 }
  0x37   :  { %3194 = dma.done.wait [#allocation6], 10240  }
  0x38   :  { %3195 = vsyncadd [#allocation6], 4294957056  ;;  %v2695_v0 = vld [vmem:[#allocation2 + $0x4] ss:$16 sps:$4 sm:$0xff]   ;;  %v2697_v1 = vld [vmem:[#allocation2 + $0xc] ss:$16 sps:$4 sm:$0xff]   ;;  %v74_v38 = vlaneseq }
  0x39   :  { %1281 = vmatprep.subr.bf16.mxu0 %v2695_v0  ;;  %v2699_v2 = vld [vmem:[#allocation2] ss:$16 sps:$4 sm:$0xff]   ;;  %v2700_v3 = vld [vmem:[#allocation2 + $0x8] ss:$16 sps:$4 sm:$0xff]   ;;  %1404 = vmatprep.subr.bf16.mxu1 %v2697_v1  ;;  %v2701_v4 = vld [vmem:[#allocation2 + $0x24] ss:$16 sps:$4 sm:$0xff]  }
  0x3a   :  { %1282 = vmatpush1.bf16.msra.mxu0 %v2699_v2  ;;  %1405 = vmatpush1.bf16.msra.mxu1 %v2700_v3  ;;  %v2703_v5 = vld [vmem:[#allocation2 + $0x2c] ss:$16 sps:$4 sm:$0xff]   ;;  %v2705_v6 = vld [vmem:[#allocation2 + $0x20] ss:$16 sps:$4 sm:$0xff]   ;;  %v2706_v7 = vld [vmem:[#allocation2 + $0x28] ss:$16 sps:$4 sm:$0xff]  }
  0x3b   :  { %1283 = vmatprep.subr.bf16.mxu0 %v2701_v4  ;;  %1406 = vmatprep.subr.bf16.mxu1 %v2703_v5  ;;  %v2707_v8 = vld [vmem:[#allocation2 + $0x44] ss:$16 sps:$4 sm:$0xff]   ;;  %v2709_v9 = vld [vmem:[#allocation2 + $0x4c] ss:$16 sps:$4 sm:$0xff]   ;;  %v2711_v10 = vld [vmem:[#allocation2 + $0x40] ss:$16 sps:$4 sm:$0xff]  }
  0x3c   :  { %v2712_v11 = vld [vmem:[#allocation2 + $0x48] ss:$16 sps:$4 sm:$0xff]   ;;  %v2713_v12 = vld [vmem:[#allocation2 + $0x64] ss:$16 sps:$4 sm:$0xff]   ;;  %v2715_v13 = vld [vmem:[#allocation2 + $0x6c] ss:$16 sps:$4 sm:$0xff]  }
  0x3d   :  { %v2717_v14 = vld [vmem:[#allocation2 + $0x60] ss:$16 sps:$4 sm:$0xff]   ;;  %v2718_v15 = vld [vmem:[#allocation2 + $0x68] ss:$16 sps:$4 sm:$0xff]   ;;  %v2719_v16 = vld [vmem:[#allocation2 + $0x84] ss:$16 sps:$4 sm:$0xff]  }
  0x3e   :  { %1284 = vmatpush1.bf16.msra.mxu0 %v2705_v6  ;;  %1407 = vmatpush1.bf16.msra.mxu1 %v2706_v7  ;;  %v2721_v17 = vld [vmem:[#allocation2 + $0x8c] ss:$16 sps:$4 sm:$0xff]   ;;  %v2723_v18 = vld [vmem:[#allocation2 + $0x80] ss:$16 sps:$4 sm:$0xff]   ;;  %v2724_v19 = vld [vmem:[#allocation2 + $0x88] ss:$16 sps:$4 sm:$0xff]  }
  0x3f   :  { %1285 = vmatprep.subr.bf16.mxu0 %v2707_v8  ;;  %1408 = vmatprep.subr.bf16.mxu1 %v2709_v9  ;;  %v2725_v20 = vld [vmem:[#allocation2 + $0xa4] ss:$16 sps:$4 sm:$0xff]   ;;  %v2727_v21 = vld [vmem:[#allocation2 + $0xac] ss:$16 sps:$4 sm:$0xff]   ;;  %v2729_v22 = vld [vmem:[#allocation2 + $0xa0] ss:$16 sps:$4 sm:$0xff]  }
  0x40   :  { %v2730_v23 = vld [vmem:[#allocation2 + $0xa8] ss:$16 sps:$4 sm:$0xff]   ;;  %v2731_v24 = vld [vmem:[#allocation2 + $0xc4] ss:$16 sps:$4 sm:$0xff]   ;;  %v2733_v25 = vld [vmem:[#allocation2 + $0xcc] ss:$16 sps:$4 sm:$0xff]  }
  0x41   :  { %v2735_v26 = vld [vmem:[#allocation2 + $0xc0] ss:$16 sps:$4 sm:$0xff]   ;;  %v2736_v27 = vld [vmem:[#allocation2 + $0xc8] ss:$16 sps:$4 sm:$0xff]   ;;  %v2737_v28 = vld [vmem:[#allocation2 + $0xe4] ss:$16 sps:$4 sm:$0xff]  }
  0x42   :  { %1286 = vmatpush1.bf16.msra.mxu0 %v2711_v10  ;;  %1409 = vmatpush1.bf16.msra.mxu1 %v2712_v11  ;;  %v2739_v29 = vld [vmem:[#allocation2 + $0xec] ss:$16 sps:$4 sm:$0xff]   ;;  %v2741_v30 = vld [vmem:[#allocation2 + $0xe0] ss:$16 sps:$4 sm:$0xff]   ;;  %v2742_v31 = vld [vmem:[#allocation2 + $0xe8] ss:$16 sps:$4 sm:$0xff]  }
  0x43   :  { %1287 = vmatprep.subr.bf16.mxu0 %v2713_v12  ;;  %1410 = vmatprep.subr.bf16.mxu1 %v2715_v13  ;;  %v2743_v32 = vld [vmem:[#allocation2 + $0x104] ss:$16 sps:$4 sm:$0xff]   ;;  %v2745_v33 = vld [vmem:[#allocation2 + $0x10c] ss:$16 sps:$4 sm:$0xff]   ;;  %v2747_v34 = vld [vmem:[#allocation2 + $0x100] ss:$16 sps:$4 sm:$0xff]  }
  0x44   :  { %v2748_v35 = vld [vmem:[#allocation2 + $0x108] ss:$16 sps:$4 sm:$0xff]   ;;  %v3207_v36 = vmov 1983009808   ;;  %v2749_v39 = vld [vmem:[#allocation2 + $0x124] ss:$16 sps:$4 sm:$0xff]  }
  0x45   :  { %v72_v37 = vunpack.c.l.s4 %v3207_v36  ;;  %v2751_v40 = vld [vmem:[#allocation2 + $0x12c] ss:$16 sps:$4 sm:$0xff]   ;;  %v2753_v41 = vld [vmem:[#allocation2 + $0x120] ss:$16 sps:$4 sm:$0xff]   ;;  %v3282_v43 = vshrl.u32 %v74_v38, 7  ;;  %vm3209_vm0 = vmmov 0  }
  0x46   :  { %1288 = vmatpush1.bf16.msra.mxu0 %v2717_v14  ;;  %1411 = vmatpush1.bf16.msra.mxu1 %v2718_v15  ;;  %v2754_v44 = vld [vmem:[#allocation2 + $0x128] ss:$16 sps:$4 sm:$0xff]   ;;  %v2755_v45 = vld [vmem:[#allocation2 + $0x144] ss:$16 sps:$4 sm:$0xff]   ;;  %v2757_v46 = vld [vmem:[#allocation2 + $0x14c] ss:$16 sps:$4 sm:$0xff]  }
  0x47   :  { %1289 = vmatprep.subr.bf16.mxu0 %v2719_v16  ;;  %1412 = vmatprep.subr.bf16.mxu1 %v2721_v17  ;;  %v73_v42 = vunpack.c.0.s8 %v72_v37  ;;  %v2759_v47 = vld [vmem:[#allocation2 + $0x140] ss:$16 sps:$4 sm:$0xff]   ;;  %v2760_v48 = vld [vmem:[#allocation2 + $0x148] ss:$16 sps:$4 sm:$0xff]   ;;  %v2761_v50 = vld [vmem:[#allocation2 + $0x164] ss:$16 sps:$4 sm:$0xff]  }
  0x48   :  { %v2763_v51 = vld [vmem:[#allocation2 + $0x16c] ss:$16 sps:$4 sm:$0xff]   ;;  %v66_v52 = vld [vmem:[%s3372_s0] sm:$0xff]  ;;  %v2766_v55 = vld [vmem:[#allocation2 + $0x168] ss:$16 sps:$4 sm:$0xff]  }
  0x49   :  { %v76_v49 = vsub.s32 %v73_v42, %v3282_v43  ;;  %v2765_v53 = vld [vmem:[#allocation2 + $0x160] ss:$16 sps:$4 sm:$0xff]   ;;  %v2767_v56 = vld [vmem:[#allocation2 + $0x184] ss:$16 sps:$4 sm:$0xff]   ;;  %v2769_v57 = vld [vmem:[#allocation2 + $0x18c] ss:$16 sps:$4 sm:$0xff]   ;;  %v70_v4 = vcombine.high %v66_v52, %v66_v52 }
  0x4a   :  { %1290 = vmatpush1.bf16.msra.mxu0 %v2723_v18  ;;  %1413 = vmatpush1.bf16.msra.mxu1 %v2724_v19  ;;  %v2771_v59 = vld [vmem:[#allocation2 + $0x180] ss:$16 sps:$4 sm:$0xff]   ;;  %v2772_v61 = vld [vmem:[#allocation2 + $0x188] ss:$16 sps:$4 sm:$0xff]   ;;  %v2773_v62 = vld [vmem:[#allocation2 + $0x1a4] ss:$16 sps:$4 sm:$0xff]  }
  0x4b   :  { %1291 = vmatprep.subr.bf16.mxu0 %v2725_v20  ;;  %1414 = vmatprep.subr.bf16.mxu1 %v2727_v21  ;;  %v77_v54 = vrot.slane %v66_v52, %v76_v49  ;;  %v2775_v63 = vld [vmem:[#allocation2 + $0x1ac] ss:$16 sps:$4 sm:$0xff]   ;;  %v2777_v0 = vld [vmem:[#allocation2 + $0x1a0] ss:$16 sps:$4 sm:$0xff]   ;;  %v2778_v1 = vld [vmem:[#allocation2 + $0x1a8] ss:$16 sps:$4 sm:$0xff]   ;;  %v3288_v9 = vrot.slane %v70_v4, %v76_v49 }
  0x4c   :  { %v2779_v2 = vld [vmem:[#allocation2 + $0x1c4] ss:$16 sps:$4 sm:$0xff]   ;;  %v2781_v3 = vld [vmem:[#allocation2 + $0x1cc] ss:$16 sps:$4 sm:$0xff]   ;;  %v2783_v5 = vld [vmem:[#allocation2 + $0x1c0] ss:$16 sps:$4 sm:$0xff]  }
  0x4d   :  { %v85_v58 = vcombine.high %v77_v54, %v77_v54  ;;  %v2784_v6 = vld [vmem:[#allocation2 + $0x1c8] ss:$16 sps:$4 sm:$0xff]   ;;  %v2785_v7 = vld [vmem:[#allocation2 + $0x1e4] ss:$16 sps:$4 sm:$0xff]   ;;  %v2787_v8 = vld [vmem:[#allocation2 + $0x1ec] ss:$16 sps:$4 sm:$0xff]   ;;  %v86_v14 = vcombine.high %v3288_v9, %v3288_v9  ;;  %v101_v16 = vpack.c.bf16 %v77_v54, %v77_v54 }
  0x4e   :  { %1292 = vmatpush1.bf16.msra.mxu0 %v2729_v22  ;;  %1415 = vmatpush1.bf16.msra.mxu1 %v2730_v23  ;;  %v2789_v10 = vld [vmem:[#allocation2 + $0x1e0] ss:$16 sps:$4 sm:$0xff]   ;;  %v2790_v11 = vld [vmem:[#allocation2 + $0x1e8] ss:$16 sps:$4 sm:$0xff]   ;;  %v2794_v12 = vld [vmem:[#allocation2 + $0x204] ss:$16 sps:$4 sm:$0xff]  }
  0x4f   :  { %1293 = vmatprep.subr.bf16.mxu0 %v2731_v24  ;;  %1416 = vmatprep.subr.bf16.mxu1 %v2733_v25  ;;  %v102_v60 = vpack.c.bf16 %v85_v58, %v85_v58  ;;  %v2797_v13 = vld [vmem:[#allocation2 + $0x20c] ss:$16 sps:$4 sm:$0xff]   ;;  %v2792_v15 = vld [vmem:[#allocation2 + $0x200] ss:$16 sps:$4 sm:$0xff]   ;;  %v2795_v17 = vld [vmem:[#allocation2 + $0x208] ss:$16 sps:$4 sm:$0xff]   ;;  %v104_v20 = vpack.c.bf16 %v86_v14, %v86_v14 }
  0x50   :  { %v2800_v18 = vld [vmem:[#allocation2 + $0x224] ss:$16 sps:$4 sm:$0xff]   ;;  %v2803_v19 = vld [vmem:[#allocation2 + $0x22c] ss:$16 sps:$4 sm:$0xff]   ;;  %v2798_v21 = vld [vmem:[#allocation2 + $0x220] ss:$16 sps:$4 sm:$0xff]  }
  0x51   :  { %1313 = vmatprep.mubr.bf16.mxu0 %v102_v60  ;;  %1436 = vmatprep.mubr.bf16.mxu1 %v102_v60  ;;  %v2801_v22 = vld [vmem:[#allocation2 + $0x228] ss:$16 sps:$4 sm:$0xff]   ;;  %v2806_v23 = vld [vmem:[#allocation2 + $0x244] ss:$16 sps:$4 sm:$0xff]   ;;  %v2809_v24 = vld [vmem:[#allocation2 + $0x24c] ss:$16 sps:$4 sm:$0xff]  }
  0x52   :  { %1294 = vmatpush1.bf16.msra.mxu0 %v2735_v26  ;;  %1417 = vmatpush1.bf16.msra.mxu1 %v2736_v27  ;;  %v2804_v25 = vld [vmem:[#allocation2 + $0x240] ss:$16 sps:$4 sm:$0xff]   ;;  %v2807_v26 = vld [vmem:[#allocation2 + $0x248] ss:$16 sps:$4 sm:$0xff]   ;;  %v2812_v27 = vld [vmem:[#allocation2 + $0x264] ss:$16 sps:$4 sm:$0xff]  }
  0x53   :  { %1295 = vmatprep.subr.bf16.mxu0 %v2737_v28  ;;  %1418 = vmatprep.subr.bf16.mxu1 %v2739_v29  ;;  %v2815_v28 = vld [vmem:[#allocation2 + $0x26c] ss:$16 sps:$4 sm:$0xff]   ;;  %v2810_v29 = vld [vmem:[#allocation2 + $0x260] ss:$16 sps:$4 sm:$0xff]   ;;  %v2825_v38 = vld [vmem:[#allocation2 + $0x2a8] ss:$16 sps:$4 sm:$0xff]  }
  0x54   :  { %v2827_v36 = vld [vmem:[#allocation2 + $0x2ac] ss:$16 sps:$4 sm:$0xff]   ;;  %v2822_v37 = vld [vmem:[#allocation2 + $0x2a0] ss:$16 sps:$4 sm:$0xff]   ;;  %v2831_v42 = vld [vmem:[#allocation2 + $0x2c8] ss:$16 sps:$4 sm:$0xff]  }
  0x55   :  { %v2845_v49 = vld [vmem:[#allocation2 + $0x30c] ss:$16 sps:$4 sm:$0xff]   ;;  %v2848_v52 = vld [vmem:[#allocation2 + $0x324] ss:$16 sps:$4 sm:$0xff]   ;;  %v2846_v54 = vld [vmem:[#allocation2 + $0x320] ss:$16 sps:$4 sm:$0xff]  }
  0x56   :  { %1296 = vmatpush1.bf16.msra.mxu0 %v2741_v30  ;;  %1419 = vmatpush1.bf16.msra.mxu1 %v2742_v31  ;;  %v2813_v30 = vld [vmem:[#allocation2 + $0x268] ss:$16 sps:$4 sm:$0xff]   ;;  %v2818_v31 = vld [vmem:[#allocation2 + $0x284] ss:$16 sps:$4 sm:$0xff]   ;;  %v2852_v58 = vld [vmem:[#allocation2 + $0x340] ss:$16 sps:$4 sm:$0xff]  }
  0x57   :  { %1297 = vmatprep.subr.bf16.mxu0 %v2743_v32  ;;  %1420 = vmatprep.subr.bf16.mxu1 %v2745_v33  ;;  %v2821_v32 = vld [vmem:[#allocation2 + $0x28c] ss:$16 sps:$4 sm:$0xff]   ;;  %v2816_v33 = vld [vmem:[#allocation2 + $0x280] ss:$16 sps:$4 sm:$0xff]   ;;  %v2860_v60 = vld [vmem:[#allocation2 + $0x364] ss:$16 sps:$4 sm:$0xff]  }
  0x58   :  { %v2872_v4 = vld [vmem:[#allocation2 + $0x3a4] ss:$16 sps:$4 sm:$0xff]   ;;  %v2887_v14 = vld [vmem:[#allocation2 + $0x3ec] ss:$16 sps:$4 sm:$0xff]  }
  0x5a   :  { %1298 = vmatpush1.bf16.msra.mxu0 %v2747_v34  ;;  %1421 = vmatpush1.bf16.msra.mxu1 %v2748_v35  ;;  %v2819_v34 = vld [vmem:[#allocation2 + $0x288] ss:$16 sps:$4 sm:$0xff]   ;;  %v2824_v35 = vld [vmem:[#allocation2 + $0x2a4] ss:$16 sps:$4 sm:$0xff]  }
  0x5b   :  { %1299 = vmatprep.subr.bf16.mxu0 %v2749_v39  ;;  %1422 = vmatprep.subr.bf16.mxu1 %v2751_v40  ;;  %v2830_v39 = vld [vmem:[#allocation2 + $0x2c4] ss:$16 sps:$4 sm:$0xff]   ;;  %v2833_v40 = vld [vmem:[#allocation2 + $0x2cc] ss:$16 sps:$4 sm:$0xff]  }
  0x5e   :  { %1300 = vmatpush1.bf16.msra.mxu0 %v2753_v41  ;;  %1423 = vmatpush1.bf16.msra.mxu1 %v2754_v44  ;;  %v2828_v41 = vld [vmem:[#allocation2 + $0x2c0] ss:$16 sps:$4 sm:$0xff]   ;;  %v2836_v44 = vld [vmem:[#allocation2 + $0x2e4] ss:$16 sps:$4 sm:$0xff]  }
  0x5f   :  { %1301 = vmatprep.subr.bf16.mxu0 %v2755_v45  ;;  %1424 = vmatprep.subr.bf16.mxu1 %v2757_v46  ;;  %v2839_v45 = vld [vmem:[#allocation2 + $0x2ec] ss:$16 sps:$4 sm:$0xff]   ;;  %v2834_v46 = vld [vmem:[#allocation2 + $0x2e0] ss:$16 sps:$4 sm:$0xff]  }
  0x62   :  { %1302 = vmatpush1.bf16.msra.mxu0 %v2759_v47  ;;  %1425 = vmatpush1.bf16.msra.mxu1 %v2760_v48  ;;  %v2837_v47 = vld [vmem:[#allocation2 + $0x2e8] ss:$16 sps:$4 sm:$0xff]   ;;  %v2842_v48 = vld [vmem:[#allocation2 + $0x304] ss:$16 sps:$4 sm:$0xff]  }
  0x63   :  { %1303 = vmatprep.subr.bf16.mxu0 %v2761_v50  ;;  %1426 = vmatprep.subr.bf16.mxu1 %v2763_v51  ;;  %v2840_v50 = vld [vmem:[#allocation2 + $0x300] ss:$16 sps:$4 sm:$0xff]   ;;  %v2843_v51 = vld [vmem:[#allocation2 + $0x308] ss:$16 sps:$4 sm:$0xff]  }
  0x66   :  { %1304 = vmatpush1.bf16.msra.mxu0 %v2765_v53  ;;  %1427 = vmatpush1.bf16.msra.mxu1 %v2766_v55  ;;  %v2851_v53 = vld [vmem:[#allocation2 + $0x32c] ss:$16 sps:$4 sm:$0xff]   ;;  %v2849_v55 = vld [vmem:[#allocation2 + $0x328] ss:$16 sps:$4 sm:$0xff]  }
  0x67   :  { %1305 = vmatprep.subr.bf16.mxu0 %v2767_v56  ;;  %1428 = vmatprep.subr.bf16.mxu1 %v2769_v57  ;;  %v2854_v56 = vld [vmem:[#allocation2 + $0x344] ss:$16 sps:$4 sm:$0xff]   ;;  %v2857_v57 = vld [vmem:[#allocation2 + $0x34c] ss:$16 sps:$4 sm:$0xff]  }
  0x6a   :  { %1306 = vmatpush1.bf16.msra.mxu0 %v2771_v59  ;;  %1429 = vmatpush1.bf16.msra.mxu1 %v2772_v61  ;;  %v2855_v59 = vld [vmem:[#allocation2 + $0x348] ss:$16 sps:$4 sm:$0xff]   ;;  %v2863_v61 = vld [vmem:[#allocation2 + $0x36c] ss:$16 sps:$4 sm:$0xff]  }
  0x6b   :  { %1307 = vmatprep.subr.bf16.mxu0 %v2773_v62  ;;  %1430 = vmatprep.subr.bf16.mxu1 %v2775_v63  ;;  %v2858_v62 = vld [vmem:[#allocation2 + $0x360] ss:$16 sps:$4 sm:$0xff]   ;;  %v2861_v63 = vld [vmem:[#allocation2 + $0x368] ss:$16 sps:$4 sm:$0xff]  }
  0x6e   :  { %1308 = vmatpush1.bf16.msra.mxu0 %v2777_v0  ;;  %1431 = vmatpush1.bf16.msra.mxu1 %v2778_v1  ;;  %v2866_v0 = vld [vmem:[#allocation2 + $0x384] ss:$16 sps:$4 sm:$0xff]   ;;  %v2869_v1 = vld [vmem:[#allocation2 + $0x38c] ss:$16 sps:$4 sm:$0xff]  }
  0x6f   :  { %1309 = vmatprep.subr.bf16.mxu0 %v2779_v2  ;;  %1432 = vmatprep.subr.bf16.mxu1 %v2781_v3  ;;  %v2864_v2 = vld [vmem:[#allocation2 + $0x380] ss:$16 sps:$4 sm:$0xff]   ;;  %v2867_v3 = vld [vmem:[#allocation2 + $0x388] ss:$16 sps:$4 sm:$0xff]  }
  0x72   :  { %1310 = vmatpush1.bf16.msra.mxu0 %v2783_v5  ;;  %1433 = vmatpush1.bf16.msra.mxu1 %v2784_v6  ;;  %v2875_v5 = vld [vmem:[#allocation2 + $0x3ac] ss:$16 sps:$4 sm:$0xff]   ;;  %v2870_v6 = vld [vmem:[#allocation2 + $0x3a0] ss:$16 sps:$4 sm:$0xff]  }
  0x73   :  { %1311 = vmatprep.subr.bf16.mxu0 %v2785_v7  ;;  %1434 = vmatprep.subr.bf16.mxu1 %v2787_v8  ;;  %v2873_v7 = vld [vmem:[#allocation2 + $0x3a8] ss:$16 sps:$4 sm:$0xff]   ;;  %v2878_v8 = vld [vmem:[#allocation2 + $0x3c4] ss:$16 sps:$4 sm:$0xff]  }
  0x76   :  { %1312 = vmatpush1.bf16.msra.mxu0 %v2789_v10  ;;  %1435 = vmatpush1.bf16.msra.mxu1 %v2790_v11  ;;  %v2881_v10 = vld [vmem:[#allocation2 + $0x3cc] ss:$16 sps:$4 sm:$0xff]   ;;  %v2876_v11 = vld [vmem:[#allocation2 + $0x3c0] ss:$16 sps:$4 sm:$0xff]  }
  0x77   :  { %1322 = vmatprep.subr.bf16.mxu0 %v2794_v12  ;;  %1445 = vmatprep.subr.bf16.mxu1 %v2797_v13  ;;  %v2879_v12 = vld [vmem:[#allocation2 + $0x3c8] ss:$16 sps:$4 sm:$0xff]   ;;  %v2884_v13 = vld [vmem:[#allocation2 + $0x3e4] ss:$16 sps:$4 sm:$0xff]  }
  0x79   :  { %1314 = vmatmul.mubr.bf16.vlgmr.msra.gmra.mrb[0].mxu0 %v101_v16  ;;  %1437 = vmatmul.mubr.bf16.vlgmr.msra.gmra.mrb[0].mxu1 %v101_v16  ;;  %v2885_v16 = vld [vmem:[#allocation2 + $0x3e8] ss:$16 sps:$4 sm:$0xff]  }
  0x7a   :  { %1323 = vmatpush1.bf16.msra.mxu0 %v2792_v15  ;;  %1446 = vmatpush1.bf16.msra.mxu1 %v2795_v17  ;;  %v2882_v15 = vld [vmem:[#allocation2 + $0x3e0] ss:$16 sps:$4 sm:$0xff]   ;;  %v2890_v17 = vld [vmem:[#allocation2 + $0x404] ss:$16 sps:$4 sm:$0xff]  }
  0x7b   :  { %1324 = vmatprep.subr.bf16.mxu0 %v2800_v18  ;;  %1447 = vmatprep.subr.bf16.mxu1 %v2803_v19  ;;  %v2893_v18 = vld [vmem:[#allocation2 + $0x40c] ss:$16 sps:$4 sm:$0xff]   ;;  %v2888_v19 = vld [vmem:[#allocation2 + $0x400] ss:$16 sps:$4 sm:$0xff]  }
  0x7c   :  { %1354 = vmatprep.mubr.bf16.mxu0 %v104_v20  ;;  %1477 = vmatprep.mubr.bf16.mxu1 %v104_v20  ;;  %v2891_v20 = vld [vmem:[#allocation2 + $0x408] ss:$16 sps:$4 sm:$0xff]  }
  0x7e   :  { %1325 = vmatpush1.bf16.msra.mxu0 %v2798_v21  ;;  %1448 = vmatpush1.bf16.msra.mxu1 %v2801_v22  ;;  %v103_v21 = vpack.c.bf16 %v3288_v9, %v3288_v9  ;;  %v2896_v22 = vld [vmem:[#allocation2 + $0x424] ss:$16 sps:$4 sm:$0xff]   ;;  %v2897_v9 = vld [vmem:[#allocation2 + $0x428] ss:$16 sps:$4 sm:$0xff]  }
  0x7f   :  { %1326 = vmatprep.subr.bf16.mxu0 %v2806_v23  ;;  %1449 = vmatprep.subr.bf16.mxu1 %v2809_v24  ;;  %v3297_v23 = vld.sshfl [vmem:[%s3372_s0 + $0x8] sm:$0x33 pattern:$0x76325410]  ;;  %v2899_v24 = vld [vmem:[#allocation2 + $0x42c] ss:$16 sps:$4 sm:$0xff]  }
  0x82   :  { %1327 = vmatpush1.bf16.msra.mxu0 %v2804_v25  ;;  %1450 = vmatpush1.bf16.msra.mxu1 %v2807_v26  ;;  %v94_v25 = vcombine.high %v3297_v23, %v3297_v23  ;;  %v2894_v26 = vld [vmem:[#allocation2 + $0x420] ss:$16 sps:$4 sm:$0xff]  }
  0x83   :  { %1328 = vmatprep.subr.bf16.mxu0 %v2812_v27  ;;  %1451 = vmatprep.subr.bf16.mxu1 %v2815_v28  ;;  %v2902_v28 = vld [vmem:[#allocation2 + $0x444] ss:$16 sps:$4 sm:$0xff]  }
  0x84   :  { %v106_v27 = vpack.c.bf16 %v94_v25, %v94_v25  ;;  %v2984_v25 = vld [vmem:[#allocation5] ss:$8 sps:$4 sm:$0xff]  }
  0x86   :  { %1329 = vmatpush1.bf16.msra.mxu0 %v2810_v29  ;;  %1452 = vmatpush1.bf16.msra.mxu1 %v2813_v30  ;;  %v2905_v29 = vld [vmem:[#allocation2 + $0x44c] ss:$16 sps:$4 sm:$0xff]   ;;  %v2900_v30 = vld [vmem:[#allocation2 + $0x440] ss:$16 sps:$4 sm:$0xff]  }
  0x87   :  { %1330 = vmatprep.subr.bf16.mxu0 %v2818_v31  ;;  %1453 = vmatprep.subr.bf16.mxu1 %v2821_v32  ;;  %v2903_v31 = vld [vmem:[#allocation2 + $0x448] ss:$16 sps:$4 sm:$0xff]   ;;  %v2908_v32 = vld [vmem:[#allocation2 + $0x464] ss:$16 sps:$4 sm:$0xff]  }
  0x8a   :  { %1331 = vmatpush1.bf16.msra.mxu0 %v2816_v33  ;;  %1454 = vmatpush1.bf16.msra.mxu1 %v2819_v34  ;;  %v2911_v33 = vld [vmem:[#allocation2 + $0x46c] ss:$16 sps:$4 sm:$0xff]   ;;  %v2906_v34 = vld [vmem:[#allocation2 + $0x460] ss:$16 sps:$4 sm:$0xff]  }
  0x8b   :  { %1332 = vmatprep.subr.bf16.mxu0 %v2824_v35  ;;  %1455 = vmatprep.subr.bf16.mxu1 %v2827_v36  ;;  %v2909_v35 = vld [vmem:[#allocation2 + $0x468] ss:$16 sps:$4 sm:$0xff]   ;;  %v2914_v36 = vld [vmem:[#allocation2 + $0x484] ss:$16 sps:$4 sm:$0xff]  }
  0x8e   :  { %1333 = vmatpush1.bf16.msra.mxu0 %v2822_v37  ;;  %1456 = vmatpush1.bf16.msra.mxu1 %v2825_v38  ;;  %v2917_v37 = vld [vmem:[#allocation2 + $0x48c] ss:$16 sps:$4 sm:$0xff]   ;;  %v2912_v38 = vld [vmem:[#allocation2 + $0x480] ss:$16 sps:$4 sm:$0xff]  }
  0x8f   :  { %1334 = vmatprep.subr.bf16.mxu0 %v2830_v39  ;;  %1457 = vmatprep.subr.bf16.mxu1 %v2833_v40  ;;  %v2915_v39 = vld [vmem:[#allocation2 + $0x488] ss:$16 sps:$4 sm:$0xff]   ;;  %v2920_v40 = vld [vmem:[#allocation2 + $0x4a4] ss:$16 sps:$4 sm:$0xff]  }
  0x92   :  { %1335 = vmatpush1.bf16.msra.mxu0 %v2828_v41  ;;  %1458 = vmatpush1.bf16.msra.mxu1 %v2831_v42  ;;  %v2923_v41 = vld [vmem:[#allocation2 + $0x4ac] ss:$16 sps:$4 sm:$0xff]   ;;  %v2918_v42 = vld [vmem:[#allocation2 + $0x4a0] ss:$16 sps:$4 sm:$0xff]  }
  0x93   :  { %1336 = vmatprep.subr.bf16.mxu0 %v2836_v44  ;;  %1459 = vmatprep.subr.bf16.mxu1 %v2839_v45  ;;  %v2921_v44 = vld [vmem:[#allocation2 + $0x4a8] ss:$16 sps:$4 sm:$0xff]   ;;  %v2926_v45 = vld [vmem:[#allocation2 + $0x4c4] ss:$16 sps:$4 sm:$0xff]  }
  0x96   :  { %1337 = vmatpush1.bf16.msra.mxu0 %v2834_v46  ;;  %1460 = vmatpush1.bf16.msra.mxu1 %v2837_v47  ;;  %v2929_v46 = vld [vmem:[#allocation2 + $0x4cc] ss:$16 sps:$4 sm:$0xff]   ;;  %v2924_v47 = vld [vmem:[#allocation2 + $0x4c0] ss:$16 sps:$4 sm:$0xff]  }
  0x97   :  { %1338 = vmatprep.subr.bf16.mxu0 %v2842_v48  ;;  %1461 = vmatprep.subr.bf16.mxu1 %v2845_v49  ;;  %v2927_v48 = vld [vmem:[#allocation2 + $0x4c8] ss:$16 sps:$4 sm:$0xff]   ;;  %v2932_v49 = vld [vmem:[#allocation2 + $0x4e4] ss:$16 sps:$4 sm:$0xff]  }
  0x9a   :  { %1339 = vmatpush1.bf16.msra.mxu0 %v2840_v50  ;;  %1462 = vmatpush1.bf16.msra.mxu1 %v2843_v51  ;;  %v2935_v50 = vld [vmem:[#allocation2 + $0x4ec] ss:$16 sps:$4 sm:$0xff]   ;;  %v2930_v51 = vld [vmem:[#allocation2 + $0x4e0] ss:$16 sps:$4 sm:$0xff]  }
  0x9b   :  { %1340 = vmatprep.subr.bf16.mxu0 %v2848_v52  ;;  %1463 = vmatprep.subr.bf16.mxu1 %v2851_v53  ;;  %v2933_v52 = vld [vmem:[#allocation2 + $0x4e8] ss:$16 sps:$4 sm:$0xff]   ;;  %v2938_v53 = vld [vmem:[#allocation2 + $0x504] ss:$16 sps:$4 sm:$0xff]  }
  0x9e   :  { %1341 = vmatpush1.bf16.msra.mxu0 %v2846_v54  ;;  %1464 = vmatpush1.bf16.msra.mxu1 %v2849_v55  ;;  %v2941_v54 = vld [vmem:[#allocation2 + $0x50c] ss:$16 sps:$4 sm:$0xff]   ;;  %v2936_v55 = vld [vmem:[#allocation2 + $0x500] ss:$16 sps:$4 sm:$0xff]  }
  0x9f   :  { %1342 = vmatprep.subr.bf16.mxu0 %v2854_v56  ;;  %1465 = vmatprep.subr.bf16.mxu1 %v2857_v57  ;;  %v2939_v56 = vld [vmem:[#allocation2 + $0x508] ss:$16 sps:$4 sm:$0xff]   ;;  %v2944_v57 = vld [vmem:[#allocation2 + $0x524] ss:$16 sps:$4 sm:$0xff]  }
  0xa2   :  { %1343 = vmatpush1.bf16.msra.mxu0 %v2852_v58  ;;  %1466 = vmatpush1.bf16.msra.mxu1 %v2855_v59  ;;  %v2947_v58 = vld [vmem:[#allocation2 + $0x52c] ss:$16 sps:$4 sm:$0xff]   ;;  %v2942_v59 = vld [vmem:[#allocation2 + $0x520] ss:$16 sps:$4 sm:$0xff]  }
  0xa3   :  { %1344 = vmatprep.subr.bf16.mxu0 %v2860_v60  ;;  %1467 = vmatprep.subr.bf16.mxu1 %v2863_v61  ;;  %v2945_v60 = vld [vmem:[#allocation2 + $0x528] ss:$16 sps:$4 sm:$0xff]   ;;  %v2950_v61 = vld [vmem:[#allocation2 + $0x544] ss:$16 sps:$4 sm:$0xff]  }
  0xa6   :  { %1345 = vmatpush1.bf16.msra.mxu0 %v2858_v62  ;;  %1468 = vmatpush1.bf16.msra.mxu1 %v2861_v63  ;;  %v2953_v62 = vld [vmem:[#allocation2 + $0x54c] ss:$16 sps:$4 sm:$0xff]   ;;  %v2948_v63 = vld [vmem:[#allocation2 + $0x540] ss:$16 sps:$4 sm:$0xff]  }
  0xa7   :  { %1346 = vmatprep.subr.bf16.mxu0 %v2866_v0  ;;  %1469 = vmatprep.subr.bf16.mxu1 %v2869_v1  ;;  %v2951_v0 = vld [vmem:[#allocation2 + $0x548] ss:$16 sps:$4 sm:$0xff]   ;;  %v2956_v1 = vld [vmem:[#allocation2 + $0x564] ss:$16 sps:$4 sm:$0xff]  }
  0xaa   :  { %1347 = vmatpush1.bf16.msra.mxu0 %v2864_v2  ;;  %1470 = vmatpush1.bf16.msra.mxu1 %v2867_v3  ;;  %v2959_v2 = vld [vmem:[#allocation2 + $0x56c] ss:$16 sps:$4 sm:$0xff]   ;;  %v2954_v3 = vld [vmem:[#allocation2 + $0x560] ss:$16 sps:$4 sm:$0xff]  }
  0xab   :  { %1348 = vmatprep.subr.bf16.mxu0 %v2872_v4  ;;  %1471 = vmatprep.subr.bf16.mxu1 %v2875_v5  ;;  %v2957_v4 = vld [vmem:[#allocation2 + $0x568] ss:$16 sps:$4 sm:$0xff]   ;;  %v2962_v5 = vld [vmem:[#allocation2 + $0x584] ss:$16 sps:$4 sm:$0xff]  }
  0xae   :  { %1349 = vmatpush1.bf16.msra.mxu0 %v2870_v6  ;;  %1472 = vmatpush1.bf16.msra.mxu1 %v2873_v7  ;;  %v2965_v6 = vld [vmem:[#allocation2 + $0x58c] ss:$16 sps:$4 sm:$0xff]   ;;  %v2960_v7 = vld [vmem:[#allocation2 + $0x580] ss:$16 sps:$4 sm:$0xff]  }
  0xaf   :  { %1350 = vmatprep.subr.bf16.mxu0 %v2878_v8  ;;  %1473 = vmatprep.subr.bf16.mxu1 %v2881_v10  ;;  %v2963_v8 = vld [vmem:[#allocation2 + $0x588] ss:$16 sps:$4 sm:$0xff]   ;;  %v2968_v10 = vld [vmem:[#allocation2 + $0x5a4] ss:$16 sps:$4 sm:$0xff]  }
  0xb2   :  { %1351 = vmatpush1.bf16.msra.mxu0 %v2876_v11  ;;  %1474 = vmatpush1.bf16.msra.mxu1 %v2879_v12  ;;  %v2971_v11 = vld [vmem:[#allocation2 + $0x5ac] ss:$16 sps:$4 sm:$0xff]   ;;  %v2966_v12 = vld [vmem:[#allocation2 + $0x5a0] ss:$16 sps:$4 sm:$0xff]  }
  0xb3   :  { %1352 = vmatprep.subr.bf16.mxu0 %v2884_v13  ;;  %1475 = vmatprep.subr.bf16.mxu1 %v2887_v14  ;;  %v2969_v13 = vld [vmem:[#allocation2 + $0x5a8] ss:$16 sps:$4 sm:$0xff]   ;;  %v2974_v14 = vld [vmem:[#allocation2 + $0x5c4] ss:$16 sps:$4 sm:$0xff]  }
  0xb6   :  { %1353 = vmatpush1.bf16.msra.mxu0 %v2882_v15  ;;  %1476 = vmatpush1.bf16.msra.mxu1 %v2885_v16  ;;  %v2977_v15 = vld [vmem:[#allocation2 + $0x5cc] ss:$16 sps:$4 sm:$0xff]   ;;  %v2972_v16 = vld [vmem:[#allocation2 + $0x5c0] ss:$16 sps:$4 sm:$0xff]  }
  0xb7   :  { %1363 = vmatprep.subr.bf16.mxu0 %v2890_v17  ;;  %1486 = vmatprep.subr.bf16.mxu1 %v2893_v18  ;;  %v2975_v17 = vld [vmem:[#allocation2 + $0x5c8] ss:$16 sps:$4 sm:$0xff]   ;;  %v2980_v18 = vld [vmem:[#allocation2 + $0x5e4] ss:$16 sps:$4 sm:$0xff]  }
  0xb9   :  { %1355 = vmatmul.mubr.bf16.vlgmr.msra.gmra.mrb[0].mxu0 %v103_v21  ;;  %1478 = vmatmul.mubr.bf16.vlgmr.msra.gmra.mrb[0].mxu1 %v103_v21  ;;  %v2981_v21 = vld [vmem:[#allocation2 + $0x5e8] ss:$16 sps:$4 sm:$0xff]  }
  0xba   :  { %1364 = vmatpush1.bf16.msra.mxu0 %v2888_v19  ;;  %1487 = vmatpush1.bf16.msra.mxu1 %v2891_v20  ;;  %v2983_v19 = vld [vmem:[#allocation2 + $0x5ec] ss:$16 sps:$4 sm:$0xff]   ;;  %v2978_v20 = vld [vmem:[#allocation2 + $0x5e0] ss:$16 sps:$4 sm:$0xff]  }
  0xbb   :  { %1365 = vmatprep.subr.bf16.mxu0 %v2896_v22  ;;  %1488 = vmatprep.subr.bf16.mxu1 %v2899_v24  ;;  %v2986_v22 = vld [vmem:[#allocation5 + $0x4] ss:$8 sps:$4 sm:$0xff]   ;;  %v105_v24 = vpack.c.bf16 %v3297_v23, %v3297_v23  ;;  %v2996_v23 = vld [vmem:[#allocation5 + $0x40] ss:$8 sps:$4 sm:$0xff]  }
  0xbc   :  { %1395 = vmatprep.mubr.bf16.mxu0 %v106_v27  ;;  %1518 = vmatprep.mubr.bf16.mxu1 %v106_v27  ;;  %v2987_v27 = vld [vmem:[#allocation5 + $0x10] ss:$8 sps:$4 sm:$0xff]  }
  0xbe   :  { %1366 = vmatpush1.bf16.msra.mxu0 %v2894_v26  ;;  %1489 = vmatpush1.bf16.msra.mxu1 %v2897_v9  ;;  %v2989_v26 = vld [vmem:[#allocation5 + $0x14] ss:$8 sps:$4 sm:$0xff]   ;;  %v2992_v9 = vld [vmem:[#allocation5 + $0x24] ss:$8 sps:$4 sm:$0xff]  }
  0xbf   :  { %1367 = vmatprep.subr.bf16.mxu0 %v2902_v28  ;;  %1490 = vmatprep.subr.bf16.mxu1 %v2905_v29  ;;  %v2990_v28 = vld [vmem:[#allocation5 + $0x20] ss:$8 sps:$4 sm:$0xff]   ;;  %v2995_v29 = vld [vmem:[#allocation5 + $0x34] ss:$8 sps:$4 sm:$0xff]  }
  0xc2   :  { %1368 = vmatpush1.bf16.msra.mxu0 %v2900_v30  ;;  %1491 = vmatpush1.bf16.msra.mxu1 %v2903_v31  ;;  %v2993_v30 = vld [vmem:[#allocation5 + $0x30] ss:$8 sps:$4 sm:$0xff]   ;;  %v2998_v31 = vld [vmem:[#allocation5 + $0x44] ss:$8 sps:$4 sm:$0xff]  }
  0xc3   :  { %1369 = vmatprep.subr.bf16.mxu0 %v2908_v32  ;;  %1492 = vmatprep.subr.bf16.mxu1 %v2911_v33  ;;  %v3001_v32 = vld [vmem:[#allocation5 + $0x54] ss:$8 sps:$4 sm:$0xff]   ;;  %v2999_v33 = vld [vmem:[#allocation5 + $0x50] ss:$8 sps:$4 sm:$0xff]  }
  0xc6   :  { %1370 = vmatpush1.bf16.msra.mxu0 %v2906_v34  ;;  %1493 = vmatpush1.bf16.msra.mxu1 %v2909_v35  ;;  %v3004_v34 = vld [vmem:[#allocation5 + $0x64] ss:$8 sps:$4 sm:$0xff]   ;;  %v3002_v35 = vld [vmem:[#allocation5 + $0x60] ss:$8 sps:$4 sm:$0xff]  }
  0xc7   :  { %1371 = vmatprep.subr.bf16.mxu0 %v2914_v36  ;;  %1494 = vmatprep.subr.bf16.mxu1 %v2917_v37  ;;  %v3007_v36 = vld [vmem:[#allocation5 + $0x74] ss:$8 sps:$4 sm:$0xff]   ;;  %v3005_v37 = vld [vmem:[#allocation5 + $0x70] ss:$8 sps:$4 sm:$0xff]  }
  0xca   :  { %1372 = vmatpush1.bf16.msra.mxu0 %v2912_v38  ;;  %1495 = vmatpush1.bf16.msra.mxu1 %v2915_v39  ;;  %v3010_v38 = vld [vmem:[#allocation5 + $0x84] ss:$8 sps:$4 sm:$0xff]   ;;  %v3008_v39 = vld [vmem:[#allocation5 + $0x80] ss:$8 sps:$4 sm:$0xff]  }
  0xcb   :  { %1373 = vmatprep.subr.bf16.mxu0 %v2920_v40  ;;  %1496 = vmatprep.subr.bf16.mxu1 %v2923_v41  ;;  %v3013_v40 = vld [vmem:[#allocation5 + $0x94] ss:$8 sps:$4 sm:$0xff]   ;;  %v3011_v41 = vld [vmem:[#allocation5 + $0x90] ss:$8 sps:$4 sm:$0xff]  }
  0xce   :  { %1374 = vmatpush1.bf16.msra.mxu0 %v2918_v42  ;;  %1497 = vmatpush1.bf16.msra.mxu1 %v2921_v44  ;;  %v3016_v42 = vld [vmem:[#allocation5 + $0xa4] ss:$8 sps:$4 sm:$0xff]   ;;  %v3014_v44 = vld [vmem:[#allocation5 + $0xa0] ss:$8 sps:$4 sm:$0xff]  }
  0xcf   :  { %1375 = vmatprep.subr.bf16.mxu0 %v2926_v45  ;;  %1498 = vmatprep.subr.bf16.mxu1 %v2929_v46  ;;  %v3019_v45 = vld [vmem:[#allocation5 + $0xb4] ss:$8 sps:$4 sm:$0xff]   ;;  %v3017_v46 = vld [vmem:[#allocation5 + $0xb0] ss:$8 sps:$4 sm:$0xff]  }
  0xd2   :  { %1376 = vmatpush1.bf16.msra.mxu0 %v2924_v47  ;;  %1499 = vmatpush1.bf16.msra.mxu1 %v2927_v48  ;;  %v3022_v47 = vld [vmem:[#allocation5 + $0xc4] ss:$8 sps:$4 sm:$0xff]   ;;  %v3020_v48 = vld [vmem:[#allocation5 + $0xc0] ss:$8 sps:$4 sm:$0xff]  }
  0xd3   :  { %1377 = vmatprep.subr.bf16.mxu0 %v2932_v49  ;;  %1500 = vmatprep.subr.bf16.mxu1 %v2935_v50  ;;  %v3025_v49 = vld [vmem:[#allocation5 + $0xd4] ss:$8 sps:$4 sm:$0xff]   ;;  %v3023_v50 = vld [vmem:[#allocation5 + $0xd0] ss:$8 sps:$4 sm:$0xff]  }
  0xd6   :  { %1378 = vmatpush1.bf16.msra.mxu0 %v2930_v51  ;;  %1501 = vmatpush1.bf16.msra.mxu1 %v2933_v52  ;;  %v3028_v51 = vld [vmem:[#allocation5 + $0xe4] ss:$8 sps:$4 sm:$0xff]   ;;  %v3026_v52 = vld [vmem:[#allocation5 + $0xe0] ss:$8 sps:$4 sm:$0xff]  }
  0xd7   :  { %1379 = vmatprep.subr.bf16.mxu0 %v2938_v53  ;;  %1502 = vmatprep.subr.bf16.mxu1 %v2941_v54  ;;  %v3031_v53 = vld [vmem:[#allocation5 + $0xf4] ss:$8 sps:$4 sm:$0xff]   ;;  %v3029_v54 = vld [vmem:[#allocation5 + $0xf0] ss:$8 sps:$4 sm:$0xff]  }
  0xda   :  { %1380 = vmatpush1.bf16.msra.mxu0 %v2936_v55  ;;  %1503 = vmatpush1.bf16.msra.mxu1 %v2939_v56  ;;  %v3034_v55 = vld [vmem:[#allocation5 + $0x104] ss:$8 sps:$4 sm:$0xff]  }
  0xdb   :  { %1381 = vmatprep.subr.bf16.mxu0 %v2944_v57  ;;  %1504 = vmatprep.subr.bf16.mxu1 %v2947_v58  ;;  %v3080_v56 = vld [vmem:[#allocation7 + $0x40] sm:$0xff]   ;;  %v3082_v58 = vld [vmem:[#allocation7 + $0x48] sm:$0xff]  }
  0xdc   :  { %v3081_v57 = vld [vmem:[#allocation7] sm:$0xff]  }
  0xde   :  { %1382 = vmatpush1.bf16.msra.mxu0 %v2942_v59  ;;  %1505 = vmatpush1.bf16.msra.mxu1 %v2945_v60  ;;  %v3083_v59 = vld [vmem:[#allocation7 + $0x8] sm:$0xff]   ;;  %v3084_v60 = vld [vmem:[#allocation7 + $0x50] sm:$0xff]  }
  0xdf   :  { %1383 = vmatprep.subr.bf16.mxu0 %v2950_v61  ;;  %1506 = vmatprep.subr.bf16.mxu1 %v2953_v62  ;;  %v3085_v61 = vld [vmem:[#allocation7 + $0x10] sm:$0xff]   ;;  %v3086_v62 = vld [vmem:[#allocation7 + $0x58] sm:$0xff]  }
  0xe2   :  { %1384 = vmatpush1.bf16.msra.mxu0 %v2948_v63  ;;  %1507 = vmatpush1.bf16.msra.mxu1 %v2951_v0  ;;  %v3087_v63 = vld [vmem:[#allocation7 + $0x18] sm:$0xff]   ;;  %v3088_v0 = vld [vmem:[#allocation7 + $0x60] sm:$0xff]  }
  0xe3   :  { %1385 = vmatprep.subr.bf16.mxu0 %v2956_v1  ;;  %1508 = vmatprep.subr.bf16.mxu1 %v2959_v2  ;;  %v3089_v1 = vld [vmem:[#allocation7 + $0x20] sm:$0xff]   ;;  %v3090_v2 = vld [vmem:[#allocation7 + $0x68] sm:$0xff]  }
  0xe6   :  { %1386 = vmatpush1.bf16.msra.mxu0 %v2954_v3  ;;  %1509 = vmatpush1.bf16.msra.mxu1 %v2957_v4  ;;  %v3091_v3 = vld [vmem:[#allocation7 + $0x28] sm:$0xff]   ;;  %v303_v4 = vsub.s32 0, %v3282_v43 }
  0xe7   :  { %1387 = vmatprep.subr.bf16.mxu0 %v2962_v5  ;;  %1510 = vmatprep.subr.bf16.mxu1 %v2965_v6  ;;  %v3307_v5 = vld [vmem:[%s3377_s5] sm:$0xf]  ;;  %v307_v6 = vsub.s32 1, %v3282_v43 }
  0xea   :  { %1388 = vmatpush1.bf16.msra.mxu0 %v2960_v7  ;;  %1511 = vmatpush1.bf16.msra.mxu1 %v2963_v8  ;;  %v315_v7 = vsub.s32 3, %v3282_v43  ;;  %v304_v8 = vrot.slane %v3307_v5, %v303_v4 }
  0xeb   :  { %1389 = vmatprep.subr.bf16.mxu0 %v2968_v10  ;;  %1512 = vmatprep.subr.bf16.mxu1 %v2971_v11  ;;  %v308_v10 = vrot.slane %v3307_v5, %v307_v6 }
  0xec   :  { %v316_v11 = vrot.slane %v3307_v5, %v315_v7  ;;  %v3208_v7 = vmov 0.0  }
  0xee   :  { %1390 = vmatpush1.bf16.msra.mxu0 %v2966_v12  ;;  %1513 = vmatpush1.bf16.msra.mxu1 %v2969_v13 }
  0xef   :  { %1391 = vmatprep.subr.bf16.mxu0 %v2974_v14  ;;  %1514 = vmatprep.subr.bf16.mxu1 %v2977_v15 }
  0xf2   :  { %1392 = vmatpush1.bf16.msra.mxu0 %v2972_v16  ;;  %1515 = vmatpush1.bf16.msra.mxu1 %v2975_v17 }
  0xf3   :  { %1393 = vmatprep.subr.bf16.mxu0 %v2980_v18  ;;  %1516 = vmatprep.subr.bf16.mxu1 %v2983_v19 }
  0xf6   :  { %1394 = vmatpush1.bf16.msra.mxu0 %v2978_v20  ;;  %1517 = vmatpush1.bf16.msra.mxu1 %v2981_v21 }
  0xf7   :  { %1931 = vmatprep.subr.bf16.mxu0 %v2986_v22  ;;  %2605 = vmatprep.subr.bf16.mxu1 %v3080_v56  ;;  %v3071_v56 = vld [vmem:[#allocation5 + $0x1d0] ss:$8 sps:$4 sm:$0xff]  }
  0xf9   :  { %1396 = vmatmul.mubr.bf16.vlgmr.msra.gmra.mrb[0].mxu0 %v105_v24  ;;  %1519 = vmatmul.mubr.bf16.vlgmr.msra.gmra.mrb[0].mxu1 %v105_v24 }
  0xfa   :  { %1932 = vmatpush1.bf16.msra.mxu0 %v2984_v25  ;;  %2606 = vmatpush3.bf16.msra.mxu1 %v3081_v57 }
  0xfb   :  { %1933 = vmatprep.subr.bf16.mxu0 %v2989_v26  ;;  %2607 = vmatprep.subr.bf16.mxu1 %v3082_v58  ;;  %v3076_v58 = vld [vmem:[#allocation5 + $0x1e4] ss:$8 sps:$4 sm:$0xff]  }
  0xfe   :  { %1934 = vmatpush1.bf16.msra.mxu0 %v2987_v27  ;;  %2608 = vmatpush3.bf16.msra.mxu1 %v3083_v59  ;;  %v3074_v59 = vld [vmem:[#allocation5 + $0x1e0] ss:$8 sps:$4 sm:$0xff]  }
  0xff   :  { %1935 = vmatprep.subr.bf16.mxu0 %v2992_v9  ;;  %2609 = vmatprep.subr.bf16.mxu1 %v3084_v60  ;;  %v3032_v9 = vld [vmem:[#allocation5 + $0x100] ss:$8 sps:$4 sm:$0xff]  }
 0x102   :  { %1936 = vmatpush1.bf16.msra.mxu0 %v2990_v28  ;;  %2610 = vmatpush3.bf16.msra.mxu1 %v3085_v61  ;;  %v3079_v61 = vld [vmem:[#allocation5 + $0x1f4] ss:$8 sps:$4 sm:$0xff]  }
 0x103   :  { %1937 = vmatprep.subr.bf16.mxu0 %v2995_v29  ;;  %2611 = vmatprep.subr.bf16.mxu1 %v3086_v62  ;;  %v3037_v29 = vld [vmem:[#allocation5 + $0x114] ss:$8 sps:$4 sm:$0xff]   ;;  %v3077_v62 = vld [vmem:[#allocation5 + $0x1f0] ss:$8 sps:$4 sm:$0xff]  }
 0x106   :  { %1938 = vmatpush1.bf16.msra.mxu0 %v2993_v30  ;;  %2612 = vmatpush3.bf16.msra.mxu1 %v3087_v63 }
 0x107   :  { %1939 = vmatprep.subr.bf16.mxu0 %v2998_v31  ;;  %2613 = vmatprep.subr.bf16.mxu1 %v3088_v0  ;;  %v3035_v31 = vld [vmem:[#allocation5 + $0x110] ss:$8 sps:$4 sm:$0xff]  }
 0x10a   :  { %1940 = vmatpush1.bf16.msra.mxu0 %v2996_v23  ;;  %2614 = vmatpush3.bf16.msra.mxu1 %v3089_v1  ;;  %v3040_v23 = vld [vmem:[#allocation5 + $0x124] ss:$8 sps:$4 sm:$0xff]   ;;  %v3092_v1 = vld [vmem:[#allocation7 + $0x70] sm:$0xff]  }
 0x10b   :  { %1941 = vmatprep.subr.bf16.mxu0 %v3001_v32  ;;  %2615 = vmatprep.subr.bf16.mxu1 %v3090_v2  ;;  %v3038_v32 = vld [vmem:[#allocation5 + $0x120] ss:$8 sps:$4 sm:$0xff]   ;;  %v3093_v2 = vld [vmem:[#allocation7 + $0x30] sm:$0xff]  }
 0x10e   :  { %1942 = vmatpush1.bf16.msra.mxu0 %v2999_v33  ;;  %2616 = vmatpush3.bf16.msra.mxu1 %v3091_v3  ;;  %v3043_v33 = vld [vmem:[#allocation5 + $0x134] ss:$8 sps:$4 sm:$0xff]  }
 0x10f   :  { %1943 = vmatprep.subr.bf16.mxu0 %v3004_v34  ;;  %v3041_v34 = vld [vmem:[#allocation5 + $0x130] ss:$8 sps:$4 sm:$0xff]   ;;  %2617 = vmatprep.subr.bf16.mxu1 %v3092_v1 }
 0x110   :  { %v3094_v3 = vld [vmem:[#allocation7 + $0x78] sm:$0xff]  }
 0x112   :  { %1944 = vmatpush1.bf16.msra.mxu0 %v3002_v35  ;;  %v3046_v35 = vld [vmem:[#allocation5 + $0x144] ss:$8 sps:$4 sm:$0xff]   ;;  %2618 = vmatpush3.bf16.msra.mxu1 %v3093_v2 }
 0x113   :  { %1945 = vmatprep.subr.bf16.mxu0 %v3007_v36  ;;  %v3044_v36 = vld [vmem:[#allocation5 + $0x140] ss:$8 sps:$4 sm:$0xff]   ;;  %2619 = vmatprep.subr.bf16.mxu1 %v3094_v3 }
 0x116   :  { %1946 = vmatpush1.bf16.msra.mxu0 %v3005_v37  ;;  %v3049_v37 = vld [vmem:[#allocation5 + $0x154] ss:$8 sps:$4 sm:$0xff]  }
 0x117   :  { %1947 = vmatprep.subr.bf16.mxu0 %v3010_v38  ;;  %v3047_v38 = vld [vmem:[#allocation5 + $0x150] ss:$8 sps:$4 sm:$0xff]  }
 0x11a   :  { %1948 = vmatpush1.bf16.msra.mxu0 %v3008_v39  ;;  %v3052_v39 = vld [vmem:[#allocation5 + $0x164] ss:$8 sps:$4 sm:$0xff]  }
 0x11b   :  { %1949 = vmatprep.subr.bf16.mxu0 %v3013_v40  ;;  %v3050_v40 = vld [vmem:[#allocation5 + $0x160] ss:$8 sps:$4 sm:$0xff]  }
 0x11e   :  { %1950 = vmatpush1.bf16.msra.mxu0 %v3011_v41  ;;  %v3055_v41 = vld [vmem:[#allocation5 + $0x174] ss:$8 sps:$4 sm:$0xff]  }
 0x11f   :  { %1951 = vmatprep.subr.bf16.mxu0 %v3016_v42  ;;  %v3053_v42 = vld [vmem:[#allocation5 + $0x170] ss:$8 sps:$4 sm:$0xff]  }
 0x122   :  { %1952 = vmatpush1.bf16.msra.mxu0 %v3014_v44  ;;  %v3058_v44 = vld [vmem:[#allocation5 + $0x184] ss:$8 sps:$4 sm:$0xff]  }
 0x123   :  { %1953 = vmatprep.subr.bf16.mxu0 %v3019_v45  ;;  %v3056_v45 = vld [vmem:[#allocation5 + $0x180] ss:$8 sps:$4 sm:$0xff]  }
 0x126   :  { %1954 = vmatpush1.bf16.msra.mxu0 %v3017_v46  ;;  %v3061_v46 = vld [vmem:[#allocation5 + $0x194] ss:$8 sps:$4 sm:$0xff]  }
 0x127   :  { %1955 = vmatprep.subr.bf16.mxu0 %v3022_v47  ;;  %v3059_v47 = vld [vmem:[#allocation5 + $0x190] ss:$8 sps:$4 sm:$0xff]  }
 0x12a   :  { %1956 = vmatpush1.bf16.msra.mxu0 %v3020_v48  ;;  %v3064_v48 = vld [vmem:[#allocation5 + $0x1a4] ss:$8 sps:$4 sm:$0xff]  }
 0x12b   :  { %1957 = vmatprep.subr.bf16.mxu0 %v3025_v49  ;;  %v3062_v49 = vld [vmem:[#allocation5 + $0x1a0] ss:$8 sps:$4 sm:$0xff]  }
 0x12e   :  { %1958 = vmatpush1.bf16.msra.mxu0 %v3023_v50  ;;  %v3067_v50 = vld [vmem:[#allocation5 + $0x1b4] ss:$8 sps:$4 sm:$0xff]  }
 0x12f   :  { %1959 = vmatprep.subr.bf16.mxu0 %v3028_v51  ;;  %v3065_v51 = vld [vmem:[#allocation5 + $0x1b0] ss:$8 sps:$4 sm:$0xff]  }
 0x132   :  { %1960 = vmatpush1.bf16.msra.mxu0 %v3026_v52  ;;  %v3070_v52 = vld [vmem:[#allocation5 + $0x1c4] ss:$8 sps:$4 sm:$0xff]  }
 0x133   :  { %1961 = vmatprep.subr.bf16.mxu0 %v3031_v53  ;;  %v3068_v53 = vld [vmem:[#allocation5 + $0x1c0] ss:$8 sps:$4 sm:$0xff]  }
 0x136   :  { %1962 = vmatpush1.bf16.msra.mxu0 %v3029_v54  ;;  %v311_v54 = vsub.s32 2, %v3282_v43  ;;  %v3097_v43 = vld [vmem:[%s3376_s4 + $0x8] sm:$0xff]  }
 0x137   :  { %1972 = vmatprep.subr.bf16.mxu0 %v3034_v55  ;;  %v3073_v55 = vld [vmem:[#allocation5 + $0x1d4] ss:$8 sps:$4 sm:$0xff]  }
 0x138   :  { %v312_v57 = vrot.slane %v3307_v5, %v311_v54  ;;  %v3095_v5 = vld [vmem:[#allocation7 + $0x38] sm:$0xff]  }
 0x139   :  { %2620 = vmatpush3.bf16.msra.mxu1 %v3095_v5 }
 0x13a   :  { %2636 = vmatprep.subr.bf16.mxu1 %v3208_v7 }
 0x1cc   :  { %v1397_v12 = vpop.f32.mrb[0].mxu0  ;;  %v3318_v13 = vpop.f32.mrb[0].mxu1 }
 0x1cd   :  { %v2656_v14 = vadd.f32 %v1397_v12, %v304_v8  ;;  %v1399_v15 = vpop.f32.mrb[1].mxu0  ;;  %v1522_v16 = vpop.f32.mrb[1].mxu1  ;;  %v2658_v60 = vadd.f32 %v3318_v13, %v312_v57  ;;  %v1535_v8 = vld [vmem:[%s3377_s5 + $0x4] sm:$0x3] }
 0x1ce   :  { %v2657_v17 = vadd.f32 %v1399_v15, %v308_v10  ;;  %v2659_v18 = vadd.f32 %v1522_v16, %v316_v11  ;;  %v1401_v19 = vpop.f32.mrb[2].mxu0  ;;  %v1524_v20 = vpop.f32.mrb[2].mxu1  ;;  %v1604_v10 = vrot.slane %v1535_v8, %v303_v4  ;;  %v1608_v11 = vrot.slane %v1535_v8, %v307_v6  ;;  %v3098_v4 = vld [vmem:[%s3376_s4 + $0x10] sm:$0xff]   ;;  %v3099_v6 = vld [vmem:[%s3376_s4 + $0x18] sm:$0xff]  }
 0x1cf   :  { %v1527_v21 = vmax.f32 %v2656_v14, 0.0  ;;  %v1402_v22 = vpop.f32.mrb[3].mxu0  ;;  %v1525_v24 = vpop.f32.mrb[3].mxu1  ;;  %v1529_v63 = vmax.f32 %v2658_v60, 0.0 }
 0x1d0   :  { %v1528_v25 = vmax.f32 %v2657_v17, 0.0  ;;  %v1530_v26 = vmax.f32 %v2659_v18, 0.0  ;;  %v3100_v24 = vld [vmem:[%s3376_s4 + $0x20] sm:$0xff]  }
 0x1d1   :  { %v1531_v28 = vpack.c.bf16 %v1527_v21, %v1527_v21  ;;  %v1533_v0 = vpack.c.bf16 %v1529_v63, %v1529_v63  ;;  %v3096_v21 = vld [vmem:[%s3376_s4] sm:$0xff]  }
 0x1d2   :  { %v1532_v27 = vpack.c.bf16 %v1528_v25, %v1528_v25  ;;  %v1534_v30 = vpack.c.bf16 %v1530_v26, %v1530_v26  ;;  %v3101_v25 = vld [vmem:[%s3376_s4 + $0x28] sm:$0xff]   ;;  %v3102_v26 = vld [vmem:[%s3376_s4 + $0x30] sm:$0xff]  }
 0x1d4   :  { %1963 = vmatprep.mubr.bf16.mxu0 %v1532_v27  ;;  %v3103_v27 = vld [vmem:[%s3376_s4 + $0x38] sm:$0xff]   ;;  %s3210_s4 = smov [#allocation8]  }
 0x1d5   :  { %1964 = vmatmul.mubr.bf16.vlgmr.msra.gmra.mrb[4].mxu0 %v1531_v28  ;;  %v2579_v28 = vld [vmem:[%s3377_s5 + $0x6] ss:$0 sm:$0xff]  ;;  %s2312_s3 = sshll.u32 %s3210_s4, 4  ;;  %s2313_s3 = int_to_ptr.vmem [resolvable:$true] %s2312_s3 }
 0x1d6   :  { %1973 = vmatpush1.bf16.msra.mxu0 %v3032_v9  ;;  %2004 = vmatprep.mubr.bf16.mxu0 %v1534_v30  ;;  %s3170_s13 = scalar_lea.vmem %s2313_s3, 32  ;;  %p3175_p11 = scmp.lt.s32.totalorder %s2313_s3, %s2313_s3 }
 0x1d7   :  { %1974 = vmatprep.subr.bf16.mxu0 %v3037_v29  ;;  %p3171_p10 = scmp.ne.s32.totalorder %s2313_s3, %s3170_s13  ;;  %p3176_p12 = scmp.lt.s32.totalorder %s3170_s13, %s3170_s13 }
 0x1d9   :  { %p3177_p13 = por %p3176_p12, %p3175_p11 }
 0x1da   :  { %1975 = vmatpush1.bf16.msra.mxu0 %v3035_v31 }
 0x1db   :  { %1976 = vmatprep.subr.bf16.mxu0 %v3040_v23  ;;  %p3178_p0 = pnand %p3177_p13, %p3171_p10 }
 0x1de   :  { %1977 = vmatpush1.bf16.msra.mxu0 %v3038_v32 }
 0x1df   :  { %1978 = vmatprep.subr.bf16.mxu0 %v3043_v33 }
 0x1e2   :  { %1979 = vmatpush1.bf16.msra.mxu0 %v3041_v34 }
 0x1e3   :  { %1980 = vmatprep.subr.bf16.mxu0 %v3046_v35  ;;  %v2596_v35 = vld [vmem:[%s3377_s5 + $0x7] ss:$0 sm:$0xff] }
 0x1e6   :  { %1981 = vmatpush1.bf16.msra.mxu0 %v3044_v36 }
 0x1e7   :  { %1982 = vmatprep.subr.bf16.mxu0 %v3049_v37 }
 0x1ea   :  { %1983 = vmatpush1.bf16.msra.mxu0 %v3047_v38 }
 0x1eb   :  { %1984 = vmatprep.subr.bf16.mxu0 %v3052_v39 }
 0x1ee   :  { %1985 = vmatpush1.bf16.msra.mxu0 %v3050_v40 }
 0x1ef   :  { %1986 = vmatprep.subr.bf16.mxu0 %v3055_v41 }
 0x1f2   :  { %1987 = vmatpush1.bf16.msra.mxu0 %v3053_v42 }
 0x1f3   :  { %1988 = vmatprep.subr.bf16.mxu0 %v3058_v44 }
 0x1f6   :  { %1989 = vmatpush1.bf16.msra.mxu0 %v3056_v45 }
 0x1f7   :  { %1990 = vmatprep.subr.bf16.mxu0 %v3061_v46 }
 0x1fa   :  { %1991 = vmatpush1.bf16.msra.mxu0 %v3059_v47 }
 0x1fb   :  { %1992 = vmatprep.subr.bf16.mxu0 %v3064_v48 }
 0x1fe   :  { %1993 = vmatpush1.bf16.msra.mxu0 %v3062_v49 }
 0x1ff   :  { %1994 = vmatprep.subr.bf16.mxu0 %v3067_v50 }
 0x202   :  { %1995 = vmatpush1.bf16.msra.mxu0 %v3065_v51 }
 0x203   :  { %1996 = vmatprep.subr.bf16.mxu0 %v3070_v52 }
 0x206   :  { %1997 = vmatpush1.bf16.msra.mxu0 %v3068_v53 }
 0x207   :  { %1998 = vmatprep.subr.bf16.mxu0 %v3073_v55 }
 0x20a   :  { %1999 = vmatpush1.bf16.msra.mxu0 %v3071_v56 }
 0x20b   :  { %2000 = vmatprep.subr.bf16.mxu0 %v3076_v58 }
 0x20e   :  { %2001 = vmatpush1.bf16.msra.mxu0 %v3074_v59 }
 0x20f   :  { %2002 = vmatprep.subr.bf16.mxu0 %v3079_v61 }
 0x212   :  { %2003 = vmatpush1.bf16.msra.mxu0 %v3077_v62 }
 0x215   :  { %2005 = vmatmul.mubr.bf16.vlgmr.msra.gmra.mrb[4].mxu0 %v1533_v0 }
 0x2e8   :  { %v2006_v12 = vpop.f32.mrb[4].mxu0 }
 0x2e9   :  { %v2660_v13 = vadd.f32 %v2006_v12, %v1604_v10  ;;  %v2008_v14 = vpop.f32.mrb[5].mxu0 }
 0x2ea   :  { %v2661_v15 = vadd.f32 %v2008_v14, %v1608_v11  ;;  %v2010_v16 = vpop.f32.mrb[6].mxu0 }
 0x2eb   :  { %v2013_v17 = vmax.f32 %v2660_v13, 0.0  ;;  %v2011_v18 = vpop.f32.mrb[7].mxu0 }
 0x2ec   :  { %v2014_v19 = vmax.f32 %v2661_v15, 0.0 }
 0x2ed   :  { %v2015_v22 = vpack.c.bf16 %v2013_v17, %v2013_v17 }
 0x2ee   :  { %v2016_v20 = vpack.c.bf16 %v2014_v19, %v2014_v19 }
 0x2f0   :  { %2184 = vmatprep.mubr.bf16.mxu1 %v2016_v20 }
 0x2f1   :  { %2185 = vmatmul.mubr.bf16.vlgmr.msra.gmra.mrb[4].mxu1 %v2015_v22 }
 0x2f2   :  { %2637 = vmatpush3.bf16.msra.mxu1 %v3096_v21  ;;  %2652 = vmatprep.mubr.msk.bf16.mxu1 %vm3209_vm0, %v3208_v7 }
 0x2f3   :  { %2638 = vmatprep.subr.bf16.mxu1 %v3208_v7 }
 0x2f6   :  { %2639 = vmatpush3.bf16.msra.mxu1 %v3097_v43 }
 0x2f7   :  { %2640 = vmatprep.subr.bf16.mxu1 %v3208_v7 }
 0x2fa   :  { %2641 = vmatpush3.bf16.msra.mxu1 %v3098_v4 }
 0x2fb   :  { %2642 = vmatprep.subr.bf16.mxu1 %v3208_v7 }
 0x2fe   :  { %2643 = vmatpush3.bf16.msra.mxu1 %v3099_v6 }
 0x2ff   :  { %2644 = vmatprep.subr.bf16.mxu1 %v3208_v7 }
 0x302   :  { %2645 = vmatpush3.bf16.msra.mxu1 %v3100_v24 }
 0x303   :  { %2646 = vmatprep.subr.bf16.mxu1 %v3208_v7 }
 0x306   :  { %2647 = vmatpush3.bf16.msra.mxu1 %v3101_v25 }
 0x307   :  { %2648 = vmatprep.subr.bf16.mxu1 %v3208_v7 }
 0x30a   :  { %2649 = vmatpush3.bf16.msra.mxu1 %v3102_v26 }
 0x30b   :  { %2650 = vmatprep.subr.bf16.mxu1 %v3208_v7 }
 0x30e   :  { %2651 = vmatpush3.bf16.msra.mxu1 %v3103_v27 }
 0x3c4   :  { %v2621_v9 = vpop.f32.mrb[4].mxu1 }
 0x3c5   :  { %v2622_v29 = vpop.f32.mrb[5].mxu1 }
 0x3c6   :  { %v2623_v30 = vadd.f32 %v2622_v29, %v2621_v9  ;;  %v2624_v31 = vpop.f32.mrb[6].mxu1 }
 0x3c7   :  { %v2625_v23 = vpop.f32.mrb[7].mxu1 }
 0x3c8   :  { %v2187_v32 = vadd.f32 %v2623_v30, %v2579_v28 }
 0x3ca   :  { %v2192_v33 = vmax.f32 %v2187_v32, 0.0 }
 0x3cc   :  { %v2193_v34 = vpack.c.bf16 %v2192_v33, %v2192_v33 }
 0x3ce   :  { %2653 = vmatmul.mubr.bf16.vlgmr.msra.gmra.mrb[8].mxu1 %v2193_v34 }
 0x4a1   :  { %v2299_v36 = vpop.f32.mrb[8].mxu1 }
 0x4a2   :  { %v2300_v37 = vadd.f32 %v2596_v35, %v2299_v36  ;;  %v2654_v38 = vpop.f32.mrb[9].mxu1 }
 0x4a3   :  { %v2302_v39 = vpop.f32.mrb[10].mxu1 }
 0x4a4   :  { %2305 = vst [vmem:[#allocation8] sm:$0x3] %v2300_v37  ;;  %v2655_v40 = vpop.f32.mrb[11].mxu1 }
 0x4a5   :  { %3181 = shalt.err (!%p3178_p0)
}
 0x4a6   :  { %s3182_s5 = scalar_lea.hbm %s3378_s6, 32 }
 0x4a7   :  { %p3183_p1 = scmp.ne.s32.totalorder %s3378_s6, %s3182_s5  ;;  %p3186_p2 = scmp.lt.u32.totalorder %s3182_s5, %s3378_s6 }
 0x4a9   :  { %p3188_p3 = pnand %p3186_p2, %p3183_p1 }
 0x4ab   :  { %3191 = shalt.err (!%p3188_p3)
}
 0x4ac   :  { %2315 = dma.vmem_to_hbm [thread:$0]  %s2313_s3, 32, %s3378_s6, [#allocation4]  }
 0x4ad   :  { %3196 = dma.done.wait [#allocation4], 32  }
 0x4ae   :  { %3197 = vsyncadd [#allocation4], 4294967264 }
 0x4af   :  { %2319 = vsyncpa [#allocation3], 1 }
 0x4b0   :  { %2320 = vsyncpa [#allocation6], 1 }
 0x4b1   :  { %2321 = vsyncpa [#allocation4], 1 }

</bundles_post_ra>
